<compile_context>
chip_gen: v5e
topology: v5e:2x2
jax: 0.10.0
libtpu: 0.0.40
codegen_flags: <defaults>
</compile_context>

<pallas_src>
import math

import jax
import jax.numpy as jnp
from jax.experimental import pallas as pl
from jax.experimental.pallas import tpu as pltpu


def _round_up(a, b):
    return (a + b - 1) // b * b


def _device_info():
    """Best-effort (physical VMEM bytes, TensorCores per device, default tm)."""
    vmem = None
    try:
        vmem = int(pltpu.get_tpu_info().vmem_capacity_bytes)
    except Exception:
        vmem = None
    kind = ""
    try:
        kind = jax.devices()[0].device_kind.lower()
    except Exception:
        pass
    if "v6" in kind:                                     # v6e: 128 MiB, 1 TC
        phys, cores, tm = 128 << 20, 1, 1024
    elif "v5 lite" in kind or "v5e" in kind or "v5lite" in kind:
        phys, cores, tm = 128 << 20, 1, 256              # v5e: compute-bound at 256
    elif "v5" in kind or "v4" in kind:                   # v5p / v4 megacore
        phys, cores, tm = 128 << 20, 2, 512
    elif "7" in kind:                                    # v7x: 64 MiB, 2 TCs
        phys, cores, tm = 64 << 20, 2, 512
    else:                                                # unknown: conservative
        phys, cores, tm = 64 << 20, 2, 512
    if vmem is None:
        vmem = phys
    return vmem, cores, tm


def _make_ffn_kernel(n_sub, sub_f, out_is_f32):
    """Fused x@W1+b1 -> ReLU -> @W2+b2 over one (tm, tf) hidden tile."""

    def kernel(x_ref, w1_ref, b1_ref, w2_ref, b2_ref, o_ref, *scratch):
        # x_ref:(tm,E)  w1_ref:(E,tf)  b1_ref:(1,tf)  w2_ref:(tf,E)  b2_ref:(1,E)
        acc = o_ref if out_is_f32 else scratch[0]
        f = pl.program_id(1)

        @pl.when(f == 0)
        def _init():
            # Fold the second bias into the accumulator init (done once).
            acc[...] = jnp.broadcast_to(
                b2_ref[...].astype(jnp.float32), acc.shape)

        x = x_ref[...]
        for s in range(n_sub):           # static unroll: overlap GEMM1/GEMM2
            lo = s * sub_f
            h = jnp.dot(x, w1_ref[:, lo:lo + sub_f],
                        preferred_element_type=jnp.float32)
            h = jnp.maximum(h + b1_ref[:, lo:lo + sub_f].astype(jnp.float32),
                            0.0)
            acc[...] += jnp.dot(h.astype(w2_ref.dtype),
                                w2_ref[lo:lo + sub_f, :],
                                preferred_element_type=jnp.float32)

        if not out_is_f32:
            @pl.when(f == pl.num_programs(1) - 1)
            def _store():
                o_ref[...] = acc[...].astype(o_ref.dtype)

    return kernel


def prepare_params(w1, b1, w2, b2, compute_dtype=None):
    """One-time (per model) padding + optional cast of the FFN parameters.

    Hoisted out of the hot path so the full weight matrices are not copied
    through HBM on every forward call. Zero padding is mathematically exact.
    """
    E, F = w1.shape
    assert w2.shape == (F, E) and b1.shape == (F,) and b2.shape == (E,)
    if compute_dtype is not None:
        w1, b1, w2, b2 = (a.astype(compute_dtype) for a in (w1, b1, w2, b2))
    E_pad = _round_up(E, 128)
    F_pad = _round_up(F, 128)
    w1p = jnp.pad(w1, ((0, E_pad - E), (0, F_pad - F)))
    b1p = jnp.pad(b1, (0, F_pad - F)).reshape(1, F_pad)
    w2p = jnp.pad(w2, ((0, F_pad - F), (0, E_pad - E)))
    b2p = jnp.pad(b2, (0, E_pad - E)).reshape(1, E_pad)
    return {"w1": w1p, "b1": b1p, "w2": w2p, "b2": b2p, "E": E, "F": F}


def feed_forward(x, params, *, tm=None, tf=None):
    """x: (..., E). Returns relu(x @ W1 + b1) @ W2 + b2 in x's dtype."""
    w1p, b1p, w2p, b2p = params["w1"], params["b1"], params["w2"], params["b2"]
    E, F = params["E"], params["F"]
    E_pad, F_pad = w1p.shape
    lead = x.shape[:-1]
    assert x.shape[-1] == E
    M = int(math.prod(lead)) if lead else 1

    out_dtype = x.dtype
    cdt = w1p.dtype
    if x.dtype != cdt:
        x = x.astype(cdt)                 # single cast at the call site
    itemsize = jnp.dtype(cdt).itemsize
    out_itemsize = jnp.dtype(out_dtype).itemsize
    sub_granule = max(8, 32 // itemsize)  # f32:8, bf16:16, int8/fp8:32
    out_is_f32 = out_dtype == jnp.float32

    vmem_physical, n_cores, tm_default = _device_info()
    tm_req = tm_default if tm is None else tm
    tf_req = 512 if tf is None else tf

    # Token tile: sublane aligned, capped at M, >=2 tiles when 2 TCs exist.
    tm = max(sub_granule, _round_up(min(tm_req, M), sub_granule))
    if n_cores >= 2 and M > sub_granule:
        tm = min(tm, _round_up(pl.cdiv(M, 2), sub_granule))

    # Hidden tile: multiple of 128 that divides F_pad exactly.
    k = F_pad // 128
    f_divs = [128 * d for d in range(k, 0, -1) if k % d == 0]  # descending
    ti = 0
    while ti < len(f_divs) - 1 and f_divs[ti] > max(128, tf_req):
        ti += 1
    tf = f_divs[ti]

    budget = int(0.85 * vmem_physical)    # headroom for compiler scratch/sems

    def working(tm_, tf_):
        # Double-buffered inputs + output, optional f32 acc, hidden temporary.
        in_b = 2 * (tm_ * E_pad + E_pad * tf_ + tf_ + tf_ * E_pad + E_pad) * itemsize
        out_b = 2 * tm_ * E_pad * out_itemsize
        acc_b = 0 if out_is_f32 else tm_ * E_pad * 4
        n_sub_ = 2 if tf_ % 256 == 0 else 1
        h_b = tm_ * (tf_ // n_sub_) * (4 + itemsize)   # f32 h + cast copy
        return in_b + out_b + acc_b + h_b

    # Shrink to fit: tf first (down to 256) to keep tm (weight reuse) high.
    while working(tm, tf) > budget:
        if ti < len(f_divs) - 1 and tf > 256:
            ti += 1
            tf = f_divs[ti]
        elif tm > sub_granule:
            tm = max(sub_granule, _round_up(tm // 2, sub_granule))
        elif ti < len(f_divs) - 1:
            ti += 1
            tf = f_divs[ti]
        else:
            break

    M_pad = _round_up(M, tm)
    x2d = x.reshape(M, E)
    if M_pad != M or E_pad != E:          # pad x only when actually needed
        x2d = jnp.pad(x2d, ((0, M_pad - M), (0, E_pad - E)))

    grid = (M_pad // tm, F_pad // tf)     # reduction (F) axis last
    n_sub = 2 if tf % 256 == 0 else 1
    sub_f = tf // n_sub
    kernel = _make_ffn_kernel(n_sub, sub_f, out_is_f32)
    scratch = [] if out_is_f32 else [pltpu.VMEM((tm, E_pad), jnp.float32)]

    vmem_limit = int(min(budget, max(32 << 20, int(1.25 * working(tm, tf)))))

    out2d = pl.pallas_call(
        kernel,
        out_shape=jax.ShapeDtypeStruct((M_pad, E_pad), out_dtype),
        grid_spec=pltpu.PrefetchScalarGridSpec(
            num_scalar_prefetch=0,
            grid=grid,
            in_specs=[
                pl.BlockSpec((tm, E_pad), lambda i, f: (i, 0)),   # activations
                pl.BlockSpec((E_pad, tf), lambda i, f: (0, f)),   # W1 column tile
                pl.BlockSpec((1, tf),     lambda i, f: (0, f)),   # b1 tile
                pl.BlockSpec((tf, E_pad), lambda i, f: (f, 0)),   # W2 row tile
                pl.BlockSpec((1, E_pad),  lambda i, f: (0, 0)),   # b2 (resident)
            ],
            out_specs=pl.BlockSpec((tm, E_pad), lambda i, f: (i, 0)),
            scratch_shapes=scratch,
        ),
        compiler_params=pltpu.CompilerParams(
            dimension_semantics=("parallel", "arbitrary"),
            vmem_limit_bytes=vmem_limit,
        ),
    )(x2d, w1p, b1p, w2p, b2p)

    return out2d[:M, :E].reshape(*lead, E)


def init_params(key, embed_dim, ff_dim, dtype=jnp.float32):
    """Deterministic init mimicking torch.nn.Linear defaults (U(+/-1/sqrt(fan_in)))."""
    k1, k2, k3, k4 = jax.random.split(key, 4)
    bound1 = 1.0 / math.sqrt(embed_dim)
    bound2 = 1.0 / math.sqrt(ff_dim)
    # Stored already transposed for y = x @ W + b (PyTorch weight is (out, in)).
    w1 = jax.random.uniform(k1, (embed_dim, ff_dim), dtype, -bound1, bound1)
    b1 = jax.random.uniform(k2, (ff_dim,), dtype, -bound1, bound1)
    w2 = jax.random.uniform(k3, (ff_dim, embed_dim), dtype, -bound2, bound2)
    b2 = jax.random.uniform(k4, (embed_dim,), dtype, -bound2, bound2)
    return w1, b1, w2, b2


if __name__ == "__main__":
    key = jax.random.PRNGKey(0)
    batch, seq, embed_dim, ff_dim = 2, 8, 32, 64

    kx, kp = jax.random.split(key)
    x = jax.random.normal(kx, (batch, seq, embed_dim), jnp.float32)
    w1, b1, w2, b2 = init_params(kp, embed_dim, ff_dim)

    ref = jnp.maximum(x @ w1 + b1, 0.0) @ w2 + b2

    # Padding / layout done once, outside the hot path.
    params = prepare_params(w1, b1, w2, b2)

    # Default per-generation tiling.
    out = jax.block_until_ready(feed_forward(x, params))
    assert out.shape == (batch, seq, embed_dim)
    assert jnp.allclose(out, ref, atol=1e-5, rtol=1e-5), "mismatch vs reference"

    # Force multiple token tiles to exercise the 2-D grid / resident-output path.
    out2 = jax.block_until_ready(feed_forward(x, params, tm=8, tf=128))
    assert jnp.allclose(out2, ref, atol=1e-5, rtol=1e-5), "mismatch (tiled path)"

    # Mixed-precision path: bf16 weights/GEMMs, f32 MXU accumulation, f32 output
    # (looser tolerance is expected for bf16 operands).
    params_bf16 = prepare_params(w1, b1, w2, b2, compute_dtype=jnp.bfloat16)
    out3 = jax.block_until_ready(feed_forward(x, params_bf16))
    assert out3.shape == (batch, seq, embed_dim)
    assert jnp.allclose(out3, ref, atol=1e-1, rtol=1e-1), "mismatch (bf16 path)"

    print("KERNEL_OK")
</pallas_src>

<mosaic_0001>
module attributes {stable_mosaic.version = 11 : i64} {
  func.func @kernel(%arg0: i32, %arg1: i32, %arg2: memref<8x128xf32, #tpu.memory_space<vmem>>, %arg3: memref<128x128xf32, #tpu.memory_space<vmem>>, %arg4: memref<1x128xf32, #tpu.memory_space<vmem>>, %arg5: memref<128x128xf32, #tpu.memory_space<vmem>>, %arg6: memref<1x128xf32, #tpu.memory_space<vmem>>, %arg7: memref<8x128xf32, #tpu.memory_space<vmem>>) attributes {dimension_semantics = [#tpu.dimension_semantics<parallel>, #tpu.dimension_semantics<arbitrary>], iteration_bounds = array<i64: 2, 1>, scalar_prefetch = 0 : i64, scratch_operands = 0 : i64, tpu.core_type = #tpu.core_type<tc>, window_params = [{transform_indices = @transform_0, window_bounds = array<i64: 8, 128>}, {transform_indices = @transform_1, window_bounds = array<i64: 128, 128>}, {transform_indices = @transform_2, window_bounds = array<i64: 1, 128>}, {transform_indices = @transform_3, window_bounds = array<i64: 128, 128>}, {pipeline_mode = #tpu.pipeline_mode<synchronous>, transform_indices = @transform_4, window_bounds = array<i64: 1, 128>}, {transform_indices = @transform_5, window_bounds = array<i64: 8, 128>}]} {
    %c0_i32 = arith.constant 0 : i32
    %0 = arith.cmpi eq, %arg1, %c0_i32 : i32
    %1 = arith.extui %0 : i1 to i32
    %c0_i32_0 = arith.constant 0 : i32
    %2 = arith.cmpi ne, %1, %c0_i32_0 : i32
    scf.if %2 {
      %c0_14 = arith.constant 0 : index
      %c0_15 = arith.constant 0 : index
      %16 = vector.load %arg6[%c0_14, %c0_15] : memref<1x128xf32, #tpu.memory_space<vmem>>, vector<1x128xf32>
      %17 = vector.shape_cast %16 : vector<1x128xf32> to vector<1x128xf32>
      %18 = vector.broadcast %17 : vector<1x128xf32> to vector<8x128xf32>
      %c0_16 = arith.constant 0 : index
      %c0_17 = arith.constant 0 : index
      %19 = vector.load %arg7[%c0_16, %c0_17] : memref<8x128xf32, #tpu.memory_space<vmem>>, vector<8x128xf32>
      tpu.vector_store %arg7[%c0_16, %c0_17], %18 {strides = array<i32>} : memref<8x128xf32, #tpu.memory_space<vmem>>, vector<8x128xf32>,
    } else {
    }
    %c0 = arith.constant 0 : index
    %c0_1 = arith.constant 0 : index
    %3 = vector.load %arg2[%c0, %c0_1] : memref<8x128xf32, #tpu.memory_space<vmem>>, vector<8x128xf32>
    %c0_2 = arith.constant 0 : index
    %c0_3 = arith.constant 0 : index
    %4 = vector.load %arg3[%c0_2, %c0_3] : memref<128x128xf32, #tpu.memory_space<vmem>>, vector<128x128xf32>
    %cst = arith.constant dense<0.000000e+00> : vector<8x128xf32>
    %5 = tpu.matmul %3, %4, %cst {dimension_numbers = #tpu.dot_dimension_numbers<[1], [0], [0], [1], [0, 0, 1, 1], [], []>} : vector<8x128xf32>, vector<128x128xf32>, vector<8x128xf32> -> vector<8x128xf32>
    %c0_4 = arith.constant 0 : index
    %c0_5 = arith.constant 0 : index
    %6 = vector.load %arg4[%c0_4, %c0_5] : memref<1x128xf32, #tpu.memory_space<vmem>>, vector<1x128xf32>
    %7 = vector.broadcast %6 : vector<1x128xf32> to vector<8x128xf32>
    %8 = arith.addf %5, %7 : vector<8x128xf32>
    %cst_6 = arith.constant 0.000000e+00 : f32
    %9 = vector.broadcast %cst_6 : f32 to vector<8x128xf32>
    %10 = arith.maximumf %8, %9 : vector<8x128xf32>
    %c0_7 = arith.constant 0 : index
    %c0_8 = arith.constant 0 : index
    %11 = vector.load %arg7[%c0_7, %c0_8] : memref<8x128xf32, #tpu.memory_space<vmem>>, vector<8x128xf32>
    %c0_9 = arith.constant 0 : index
    %c0_10 = arith.constant 0 : index
    %12 = vector.load %arg5[%c0_9, %c0_10] : memref<128x128xf32, #tpu.memory_space<vmem>>, vector<128x128xf32>
    %cst_11 = arith.constant dense<0.000000e+00> : vector<8x128xf32>
    %13 = tpu.matmul %10, %12, %cst_11 {dimension_numbers = #tpu.dot_dimension_numbers<[1], [0], [0], [1], [0, 0, 1, 1], [], []>} : vector<8x128xf32>, vector<128x128xf32>, vector<8x128xf32> -> vector<8x128xf32>
    %14 = arith.addf %11, %13 : vector<8x128xf32>
    %c0_12 = arith.constant 0 : index
    %c0_13 = arith.constant 0 : index
    %15 = vector.load %arg7[%c0_12, %c0_13] : memref<8x128xf32, #tpu.memory_space<vmem>>, vector<8x128xf32>
    tpu.vector_store %arg7[%c0_12, %c0_13], %14 {strides = array<i32>} : memref<8x128xf32, #tpu.memory_space<vmem>>, vector<8x128xf32>,
    return
  }
  func.func @transform_0(%arg0: i32, %arg1: i32) -> (i32, i32) {
    %c0_i32 = arith.constant 0 : i32
    %c0_i32_0 = arith.constant 0 : i32
    return %arg0, %c0_i32 : i32, i32
  }
  func.func @transform_1(%arg0: i32, %arg1: i32) -> (i32, i32) {
    %c0_i32 = arith.constant 0 : i32
    %c0_i32_0 = arith.constant 0 : i32
    return %c0_i32, %arg1 : i32, i32
  }
  func.func @transform_2(%arg0: i32, %arg1: i32) -> (i32, i32) {
    %c0_i32 = arith.constant 0 : i32
    %c0_i32_0 = arith.constant 0 : i32
    return %c0_i32, %arg1 : i32, i32
  }
  func.func @transform_3(%arg0: i32, %arg1: i32) -> (i32, i32) {
    %c0_i32 = arith.constant 0 : i32
    %c0_i32_0 = arith.constant 0 : i32
    return %arg1, %c0_i32 : i32, i32
  }
  func.func @transform_4(%arg0: i32, %arg1: i32) -> (i32, i32) {
    %c0_i32 = arith.constant 0 : i32
    %c0_i32_0 = arith.constant 0 : i32
    %c0_i32_1 = arith.constant 0 : i32
    return %c0_i32, %c0_i32_0 : i32, i32
  }
  func.func @transform_5(%arg0: i32, %arg1: i32) -> (i32, i32) {
    %c0_i32 = arith.constant 0 : i32
    %c0_i32_0 = arith.constant 0 : i32
    return %arg0, %c0_i32 : i32, i32
  }
}

</mosaic_0001>

<bundles_post_ra>
// kernel: tpu_custom_call.1
= control target key start
LH: loop header
LB: loop body
LE: loop exit
PB: predicated region body
PF: predicated region fallthrough
CT: control target
= control target key end

     0   :  { %10 = vsyncpa [#allocation3], 0  ;;  %s1010_s0 = inlined_call_operand.hbm [shape: f32[16,128], index: 0, kind: input, shape index: {}]   ;;  %s1011_s1 = inlined_call_operand.hbm [shape: f32[128,128], index: 1, kind: input, shape index: {}]   ;;  %s1012_s2 = inlined_call_operand.vmem [shape: f32[1,128], index: 2, kind: input, shape index: {}]   ;;  %s1013_s3 = inlined_call_operand.hbm [shape: f32[128,128], index: 3, kind: input, shape index: {}]   ;;  %s1014_s4 = inlined_call_operand.vmem [shape: f32[1,128], index: 4, kind: input, shape index: {}]   ;;  %s1015_s5 = inlined_call_operand.hbm [shape: f32[16,128], index: 5, kind: output, shape index: {}]  }
   0x1   :  { %12 = vsyncpa [#allocation3 + $0x1], 0 }
   0x2   :  { %13 = vsyncpa [#allocation6], 0 }
   0x3   :  { %14 = vsyncpa [#allocation4], 0 }
   0x4   :  { %16 = vsyncpa [#allocation4 + $0x1], 0  ;;  %s853_s18 = smov 0   ;;  %s855_s19 = smov 0  }
   0x5   :  { %s857_s20 = smov 0   ;;  %s859_s21 = smov 0  }
   0x6   :  { %s861_s22 = smov 0   ;;  %s863_s23 = smov 0  }
   0x7 LB: > { %s536_s24 = sadd.s32 4294967295, %s817_s23   ;;  %p538_p0 = scmp.ge.s32.totalorder %s817_s23, 1  ;;  %s817_s23 = sphi %s863_s23, %s22_s23   ;;  %s813_s22 = sphi %s861_s22, %s1025_s22   ;;  %s809_s21 = sphi %s859_s21, %s1024_s21   ;;  %s805_s20 = sphi %s857_s20, %s1023_s20   ;;  %s801_s19 = sphi %s855_s19, %s1022_s19   ;;  %s797_s18 = sphi %s853_s18, %s1021_s18  }
   0x8   : > { %p887_p1 = scmp.eq.s32.totalorder %s536_s24, 0  ;;  %p190_p2 = scmp.lt.s32.totalorder %s817_s23, 3 }
   0x9   : > { %s203_s28 = sshll.u32 %s1011_s1, 4  ;;  %s819_s30 = smov [#allocation5]   ;;  %s204_s28 = int_to_ptr.hbm [resolvable:$true] %s203_s28 }
   0xa   : > { %p895_p3 = pnand %p538_p0, %p190_p2  ;;  %s205_s6 = sshll.u32 %s819_s30, 4  ;;  %s206_s6 = int_to_ptr.vmem [resolvable:$true] %s205_s6 }
   0xb   : > { %p542_p6 = scmp.ge.s32.totalorder %s817_s23, 2  ;;  %s226_s9 = sshll.u32 %s1013_s3, 4  ;;  %s227_s9 = int_to_ptr.hbm [resolvable:$true] %s226_s9 }
   0xc   : > { %p566_p4 = pneg %p895_p3  ;;  %s820_s10 = smov 128  }
   0xd   : > { %s821_s11 = smov 8   ;;  %s822_s12 = smov [#allocation7]  }
   0xe   : > { %p567_p5 = pnand %p566_p4, %p887_p1  ;;  %s228_s13 = sshll.u32 %s822_s12, 4  ;;  %s229_s13 = int_to_ptr.vmem [resolvable:$true] %s228_s13 }
   0xf   : > { %s34_s14 = sadd.s32 1, %s813_s22  ;;  %s537_s15 = sadd.s32 4294967294, %s817_s23  }
  0x10   : > { %569 = dma.hbm_to_vmem [thread:$0]  (!%p567_p5), %s204_s28, 2048, %s206_s6, [#allocation6], %s820_s10, %s820_s10, %s821_s11  }
  0x11   : > { %572 = dma.hbm_to_vmem [thread:$0]  (!%p567_p5), %s227_s9, 2048, %s229_s13, [#allocation6], %s820_s10, %s820_s10, %s821_s11  }
  0x12   : > { %p36_p7 = scmp.ge.s32.totalorder %s34_s14, 2  ;;  %s41_s16 = sadd.s32 1, %s805_s20 }
  0x13   : > { %p48_p8 = scmp.ne.s32.totalorder %s805_s20, %s801_s19  ;;  %p49_p9 = scmp.eq.s32.totalorder %s817_s23, 0 }
  0x14   : > { %s1027_s14 = smov (%p36_p7, %s34_s14), 0  ;;  %p54_p10 = scmp.ne.s32.totalorder %s801_s19, %s797_s18 }
  0x15   : > { %s38_s17 = ssub.s32 %s813_s22, %s1027_s14  ;;  %p177_p11 = scmp.eq.s32.totalorder %s536_s24, 1 }
  0x16   : > { %p39_p12 = scmp.eq.s32.totalorder %s38_s17, 0  ;;  %p923_p13 = por %p887_p1, %p54_p10 }
  0x17   : > { %p927_p0 = por %p177_p11, %p48_p8  ;;  %p183_p2 = scmp.eq.s32.totalorder %s537_s15, 1 }
  0x18   : > { %s932_s28 = scalar_select %p39_p12, %s805_s20, %s41_s16  }
  0x19   : > { %p50_p4 = por %p49_p9, %p48_p8  ;;  %p934_p5 = por %p183_p2, %p54_p10 }
  0x1a   : > { %s245_s6 = sand.u32 1, %s805_s20   ;;  %s544_s24 = sshll.u32 %s813_s22, 3 }
  0x1b   : > { %p583_p7 = scmp.lt.s32.totalorder %s817_s23, 2  ;;  %s543_s7 = sshll.u32 %s245_s6, 3 }
  0x1c   : > { %s253_s10 = scalar_lea.hbm %s1010_s0, %s544_s24  ;;  %s249_s12 = scalar_lea.vmem [#allocation2], %s543_s7 }
  0x1d   : > { %s255_s11 = sshll.u32 %s253_s10, 4  ;;  %s257_s13 = sshll.u32 %s249_s12, 4  ;;  %s256_s11 = int_to_ptr.hbm [resolvable:$true] %s255_s11  ;;  %s258_s13 = int_to_ptr.vmem [resolvable:$true] %s257_s13 }
  0x1e   : > { %p574_p11 = pnand %p583_p7, %p50_p4  ;;  %s246_s15 = scalar_lea.sflag [#allocation3], %s245_s6 }
  0x1f   : > { %266 = sbr.rel (%p895_p3) target bundleno = 332 (0x14c), region = 40  ;;  %s947_s16 = sand.u32 (!%p895_p3), 1, %s801_s19  }
  0x20   : > { %576 = dma.hbm_to_vmem [thread:$0]  (!%p574_p11), %s256_s11, 128, %s258_s13, %s246_s15  }
  0x21   : > { %s546_s17 = sshll.u32 (!%p895_p3), %s947_s16, 3  ;;  %s269_s24 = scalar_lea.sflag (!%p895_p3), [#allocation3], %s947_s16 }
  0x22   : > { %s953_s7 = scalar_lea.vmem (!%p895_p3), [#allocation2], %s546_s17 }
  0x24   : > { %784 = dma.done.wait (%p923_p13), %s269_s24, 128  }
  0x25   : > { %786 = vsyncadd (%p923_p13), %s269_s24, 4294967168 }
  0x26   : > { %788 = dma.done.wait (%p887_p1), [#allocation6], 4096  }
  0x27   : > { %790 = vsyncadd (%p887_p1), [#allocation6], 4294963200  ;;  %v342_v0 = vld [vmem:[#allocation5 + $0x78] sm:$0xff]  ;;  %v341_v1 = vld [vmem:[#allocation5 + $0x70] sm:$0xff]  ;;  %s551_s26 = sshll.u32 %s809_s21, 3  ;;  %s312_s12 = scalar_lea.vmem [#allocation8], %s546_s17 }
  0x28   : > { %347 = vmatpush.msra.mxu0 %v342_v0  ;;  %v340_v2 = vld [vmem:[#allocation5 + $0x68] sm:$0xff]  ;;  %v339_v3 = vld [vmem:[#allocation5 + $0x60] sm:$0xff]  ;;  %v384_v4 = vld [vmem:[#allocation7 + $0x78] sm:$0xff]  ;;  %s418_s9 = scalar_lea.hbm %s1015_s5, %s551_s26  ;;  %s420_s13 = sshll.u32 %s312_s12, 4  ;;  %s421_s13 = int_to_ptr.vmem [resolvable:$true] %s420_s13 }
  0x29   : > { %v338_v5 = vld [vmem:[#allocation5 + $0x58] sm:$0xff]  ;;  %385 = vmatpush.msra.mxu1 %v384_v4  ;;  %v383_v6 = vld [vmem:[#allocation7 + $0x70] sm:$0xff]  ;;  %v382_v7 = vld [vmem:[#allocation7 + $0x68] sm:$0xff]  ;;  %s422_s15 = sshll.u32 %s418_s9, 4  ;;  %s408_s24 = scalar_lea.sflag [#allocation4], %s947_s16  ;;  %s423_s15 = int_to_ptr.hbm [resolvable:$true] %s422_s15 }
  0x2a   : > { %348 = vmatpush.msra.mxu0 %v341_v1  ;;  %v337_v8 = vld [vmem:[#allocation5 + $0x50] sm:$0xff]  ;;  %v381_v9 = vld [vmem:[#allocation7 + $0x60] sm:$0xff]  ;;  %v336_v10 = vld [vmem:[#allocation5 + $0x48] sm:$0xff]  ;;  %s745_s21 = sshra.s32 %s423_s15, 4  ;;  %s751_s26 = scalar_lea.hbm %s1015_s5, 16  ;;  %s746_s21 = int_to_ptr.hbm [resolvable:$true] %s745_s21 }
  0x2b   : > { %386 = vmatpush.msra.mxu1 %v383_v6  ;;  %v380_v11 = vld [vmem:[#allocation7 + $0x58] sm:$0xff]  ;;  %v335_v12 = vld [vmem:[#allocation5 + $0x40] sm:$0xff]  ;;  %v379_v13 = vld [vmem:[#allocation7 + $0x50] sm:$0xff]  ;;  %p752_p9 = scmp.lt.s32.totalorder %s746_s21, %s1015_s5 }
  0x2c   : > { %349 = vmatpush.msra.mxu0 %v340_v2  ;;  %v334_v14 = vld [vmem:[#allocation5 + $0x38] sm:$0xff]  ;;  %v378_v15 = vld [vmem:[#allocation7 + $0x48] sm:$0xff]  ;;  %v333_v16 = vld [vmem:[#allocation5 + $0x30] sm:$0xff] }
  0x2d   : > { %387 = vmatpush.msra.mxu1 %v382_v7  ;;  %v377_v17 = vld [vmem:[#allocation7 + $0x40] sm:$0xff]  ;;  %v332_v18 = vld [vmem:[#allocation5 + $0x28] sm:$0xff]  ;;  %v376_v19 = vld [vmem:[#allocation7 + $0x38] sm:$0xff] }
  0x2e   : > { %350 = vmatpush.msra.mxu0 %v339_v3  ;;  %v331_v20 = vld [vmem:[#allocation5 + $0x20] sm:$0xff]  ;;  %v375_v21 = vld [vmem:[#allocation7 + $0x30] sm:$0xff]  ;;  %v330_v22 = vld [vmem:[#allocation5 + $0x18] sm:$0xff] }
  0x2f   : > { %388 = vmatpush.msra.mxu1 %v381_v9  ;;  %v374_v23 = vld [vmem:[#allocation7 + $0x28] sm:$0xff]  ;;  %v329_v24 = vld [vmem:[#allocation5 + $0x10] sm:$0xff]  ;;  %v373_v25 = vld [vmem:[#allocation7 + $0x20] sm:$0xff] }
  0x30   : > { %351 = vmatpush.msra.mxu0 %v338_v5  ;;  %v328_v26 = vld [vmem:[#allocation5 + $0x8] sm:$0xff]  ;;  %v372_v27 = vld [vmem:[#allocation7 + $0x18] sm:$0xff]  ;;  %v327_v28 = vld [vmem:[#allocation5] sm:$0xff] }
  0x31   : > { %389 = vmatpush.msra.mxu1 %v380_v11  ;;  %v326_v29 = vld [vmem:[%s953_s7] sm:$0xff]  ;;  %v370_v31 = vld [vmem:[#allocation7 + $0x8] sm:$0xff]  ;;  %v369_v32 = vld [vmem:[#allocation7] sm:$0xff]  ;;  %s747_s7 = scalar_lea.hbm %s746_s21, 8 }
  0x32   : > { %352 = vmatpush.msra.mxu0 %v337_v8  ;;  %v371_v30 = vld [vmem:[#allocation7 + $0x10] sm:$0xff]  ;;  %p748_p1 = scmp.ne.s32.totalorder %s746_s21, %s747_s7  ;;  %p753_p10 = scmp.lt.s32.totalorder %s751_s26, %s747_s7 }
  0x33   : > { %390 = vmatpush.msra.mxu1 %v379_v13  ;;  %v639_v33 = vld [vmem:[%s1012_s2] ss:$0 sm:$0xff] }
  0x34   : > { %353 = vmatpush.msra.mxu0 %v336_v10  ;;  %v640_v37 = vld [vmem:[%s1014_s4] ss:$0 sm:$0xff]  ;;  %p749_p3 = pnand %p748_p1, %p927_p0  ;;  %p754_p12 = por %p753_p10, %p752_p9 }
  0x35   : > { %391 = vmatpush.msra.mxu1 %v378_v15 }
  0x36   : > { %354 = vmatpush.msra.mxu0 %v335_v12  ;;  %p750_p8 = pneg %p749_p3 }
  0x37   : > { %392 = vmatpush.msra.mxu1 %v377_v17 }
  0x38   : > { %355 = vmatpush.msra.mxu0 %v334_v14  ;;  %p755_p13 = pnand %p754_p12, %p750_p8 }
  0x39   : > { %393 = vmatpush.msra.mxu1 %v376_v19 }
  0x3a   : > { %356 = vmatpush.msra.mxu0 %v333_v16 }
  0x3b   : > { %394 = vmatpush.msra.mxu1 %v375_v21 }
  0x3c   : > { %357 = vmatpush.msra.mxu0 %v332_v18 }
  0x3d   : > { %395 = vmatpush.msra.mxu1 %v374_v23 }
  0x3e   : > { %358 = vmatpush.msra.mxu0 %v331_v20 }
  0x3f   : > { %396 = vmatpush.msra.mxu1 %v373_v25 }
  0x40   : > { %359 = vmatpush.msra.mxu0 %v330_v22 }
  0x41   : > { %397 = vmatpush.msra.mxu1 %v372_v27 }
  0x42   : > { %360 = vmatpush.msra.mxu0 %v329_v24 }
  0x43   : > { %398 = vmatpush.msra.mxu1 %v371_v30 }
  0x44   : > { %361 = vmatpush.msra.mxu0 %v328_v26 }
  0x45   : > { %399 = vmatpush.msra.mxu1 %v370_v31 }
  0x46   : > { %362 = vmatpush.msra.mxu0 %v327_v28 }
  0x47   : > { %363 = vmatmul.f32.vlgmr.msra.gmra.mxu0 %v326_v29  ;;  %400 = vmatpush.msra.mxu1 %v369_v32 }
  0xc4   : > { %v364_v34 = vpop.f32.mrf.mxu0 }
  0xc5   : > { %v365_v35 = vadd.f32 %v639_v33, %v364_v34 }
  0xc7   : > { %v367_v36 = vmax.f32 %v365_v35, 0.0 }
  0xc9   : > { %401 = vmatmul.f32.vlgmr.msra.gmra.mxu1 %v367_v36 }
 0x146   : > { %v402_v38 = vpop.f32.mrf.mxu1 }
 0x147   : > { %v405_v39 = vadd.f32 %v640_v37, %v402_v38 }
 0x149   : > { %406 = vst [vmem:[%s312_s12] sm:$0xff] %v405_v39 }
 0x14a   : > { %758 = shalt.err (!%p755_p13)
}
 0x14b   : > { %564 = dma.vmem_to_hbm [thread:$0]  (%p927_p0), %s421_s13, 128, %s423_s15, %s408_s24  }
 0x14c PF: > { %s434_s16 = sand.u32 1, %s797_s18   ;;  %p578_p2 = pnand %p542_p6, %p934_p5 }
 0x14d   : > { %s435_s8 = scalar_lea.sflag [#allocation4], %s434_s16 }
 0x14e   : > { %p579_p4 = pneg %p578_p2 }
 0x150   : > { %792 = dma.done.wait (%p579_p4), %s435_s8, 128  }
 0x151   : > { %794 = vsyncadd (%p579_p4), %s435_s8, 4294967168  ;;  %s22_s23 = sadd.s32 1, %s817_s23   ;;  %s1021_s18 = smov %s801_s19 }
 0x152   : > { %p19_p7 = scmp.ge.s32.totalorder %s22_s23, 4   ;;  %s1022_s19 = smov %s805_s20 }
 0x153   : > { %s1023_s20 = smov %s932_s28  ;;  %s1024_s21 = smov %s813_s22 }
 0x154   : > { %s1025_s22 = smov %s1027_s14  ;;  %21 = sbr.rel (!%p19_p7) target bundleno = 7 (0x7), region = 102 }
 0x159   :  { %441 = vsyncpa [#allocation3], 1 }
 0x15a   :  { %443 = vsyncpa [#allocation3 + $0x1], 1 }
 0x15b   :  { %444 = vsyncpa [#allocation6], 1 }
 0x15c   :  { %445 = vsyncpa [#allocation4], 1 }
 0x15d   :  { %447 = vsyncpa [#allocation4 + $0x1], 1 }

</bundles_post_ra>
